<compile_context>
chip_gen: v5e
topology: v5e:2x2
jax: 0.10.0
libtpu: 0.0.40
codegen_flags: <defaults>
</compile_context>

<pallas_src>
import functools

import jax
import jax.numpy as jnp
from jax.experimental import pallas as pl
from jax.experimental.pallas import tpu as pltpu


def _round_up(n, m):
    return ((n + m - 1) // m) * m


# ----------------------------- Pallas kernel ---------------------------------
def _dnn_kernel(idx_ref, embT_ref, w1T_ref, b1T_ref, w2T_ref, b2T_ref,
                w3c_ref, b3_ref, o_ref, *, field_num, feat_num):
    """Fused embedding-gather + 2-hidden-layer MLP for one batch tile.

    Everything is transposed: features on sublanes, batch on the 128 lanes.
    """
    bt = idx_ref.shape[-1]
    idx = idx_ref[...]                       # (F, bt) int32, batch on lanes
    embT = embT_ref[...]                     # (D, feat_num) bf16, resident

    # --- Fused embedding gather -----------------------------------------
    # Per field: one-hot (feat_num, bt) via iota compare (VPU), then a tiny
    # (D, feat_num) @ (feat_num, bt) MXU matmul == exact column gather.
    iota = jax.lax.broadcasted_iota(jnp.int32, (feat_num, bt), 0)
    parts = []
    for f in range(field_num):               # static unroll, F is tiny
        row = idx[f:f + 1, :]                 # (1, bt)
        onehot = jnp.where(iota == row, 1.0, 0.0).astype(jnp.bfloat16)
        parts.append(jnp.dot(embT, onehot, preferred_element_type=jnp.float32))
    xT = jnp.concatenate(parts, axis=0).astype(jnp.bfloat16)   # (F*D, bt)

    # --- Layer 1: Linear + ReLU (bf16 MXU inputs, f32 accumulate/VPU) ----
    h = jnp.dot(w1T_ref[...], xT, preferred_element_type=jnp.float32)
    h = jnp.maximum(h + b1T_ref[...], 0.0)

    # --- Layer 2: Linear + ReLU ------------------------------------------
    h = jnp.dot(w2T_ref[...], h.astype(jnp.bfloat16),
                preferred_element_type=jnp.float32)
    h = jnp.maximum(h + b2T_ref[...], 0.0)

    # --- Output layer (hidden -> 1): VPU multiply + sublane (XLU) reduce,
    # lane-dense (1, bt) store.  Dropout is an eval-mode no-op.
    o = jnp.sum(h * w3c_ref[...], axis=0, keepdims=True) + b3_ref[...]
    o_ref[...] = o.astype(o_ref.dtype)


def dnn_pallas(idx_T, embT, w1T, b1T, w2T, b2T, w3c, b3, *,
               batch_tile, field_num, feat_num):
    """Run the fused DNN forward over a transposed, batch-padded index array.

    idx_T : (field_num, B_pad) int32
    embT  : (latent_dim, feat_num) bf16
    w1T   : (h1_p, d_in) bf16, b1T (h1_p, 1) f32
    w2T   : (h2_p, h1_p) bf16, b2T (h2_p, 1) f32
    w3c   : (h2_p, 1) f32,     b3  (1, 1)   f32
    Returns (1, B_pad) f32 logits.
    """
    F, B_pad = idx_T.shape
    D = embT.shape[0]
    h1_p, d_in = w1T.shape
    h2_p = w2T.shape[0]
    assert B_pad % batch_tile == 0 and d_in == F * D

    kernel = functools.partial(_dnn_kernel, field_num=field_num,
                               feat_num=feat_num)
    return pl.pallas_call(
        kernel,
        out_shape=jax.ShapeDtypeStruct((1, B_pad), jnp.float32),
        grid_spec=pltpu.PrefetchScalarGridSpec(
            num_scalar_prefetch=0,
            grid=(B_pad // batch_tile,),
            in_specs=[
                # Per-tile int32 indices: the only per-batch-element HBM stream.
                pl.BlockSpec((F, batch_tile), lambda i: (0, i)),
                # Resident (constant index_map) parameters, full-array blocks.
                pl.BlockSpec((D, feat_num), lambda i: (0, 0)),     # emb^T (bf16)
                pl.BlockSpec((h1_p, d_in), lambda i: (0, 0)),      # W1^T  (bf16)
                pl.BlockSpec((h1_p, 1), lambda i: (0, 0)),         # b1^T  (f32)
                pl.BlockSpec((h2_p, h1_p), lambda i: (0, 0)),      # W2^T  (bf16)
                pl.BlockSpec((h2_p, 1), lambda i: (0, 0)),         # b2^T  (f32)
                pl.BlockSpec((h2_p, 1), lambda i: (0, 0)),         # w3 column
                pl.BlockSpec((1, 1), lambda i: (0, 0)),            # b3
            ],
            out_specs=pl.BlockSpec((1, batch_tile), lambda i: (0, i)),
        ),
        compiler_params=pltpu.CompilerParams(
            # Batch tiles are independent -> shardable across TensorCores.
            dimension_semantics=("parallel",),
        ),
    )(idx_T, embT, w1T, b1T, w2T, b2T, w3c, b3)


# ------------------------------- DNN model -----------------------------------
def make_dnn_params(key, feature_num, latent_dim, dnn_dim, mlp_dims):
    ks = jax.random.split(key, 4)
    emb = jax.random.normal(ks[0], (feature_num, latent_dim), jnp.float32) * 0.01
    d_in = dnn_dim
    h1, h2 = mlp_dims
    w1 = jax.random.normal(ks[1], (d_in, h1), jnp.float32) * (1.0 / jnp.sqrt(d_in))
    b1 = jnp.zeros((1, h1), jnp.float32)
    w2 = jax.random.normal(ks[2], (h1, h2), jnp.float32) * (1.0 / jnp.sqrt(h1))
    b2 = jnp.zeros((1, h2), jnp.float32)
    w3 = jax.random.normal(ks[3], (h2, 1), jnp.float32) * (1.0 / jnp.sqrt(h2))
    b3 = jnp.zeros((1, 1), jnp.float32)
    return dict(emb=emb, w1=w1, b1=b1, w2=w2, b2=b2, w3=w3, b3=b3)


def prep_params_for_tpu(params, *, sublane=8):
    """One-time host-side prep: transpose weights to (out, in) layout, pad the
    hidden dims only to sublane granularity (multiple of 8; zero-padding is
    mathematically inert), and pre-cast MXU operands to bf16."""
    emb, w1, b1, w2, b2, w3, b3 = (params[k] for k in
                                   ("emb", "w1", "b1", "w2", "b2", "w3", "b3"))
    d_in, h1 = w1.shape
    h2 = w2.shape[1]
    h1_p = _round_up(h1, sublane)
    h2_p = _round_up(h2, sublane)

    embT = emb.T.astype(jnp.bfloat16)                                   # (D, feat)
    w1T = jnp.pad(w1, ((0, 0), (0, h1_p - h1))).T.astype(jnp.bfloat16)  # (h1_p, d_in)
    b1T = jnp.pad(b1, ((0, 0), (0, h1_p - h1))).T                       # (h1_p, 1)
    w2T = jnp.pad(w2, ((0, h1_p - h1), (0, h2_p - h2))).T.astype(jnp.bfloat16)
    b2T = jnp.pad(b2, ((0, 0), (0, h2_p - h2))).T                       # (h2_p, 1)
    w3c = jnp.pad(w3, ((0, h2_p - h2), (0, 0)))                         # (h2_p, 1)
    return dict(embT=embT, w1T=w1T, b1T=b1T, w2T=w2T, b2T=b2T, w3c=w3c, b3=b3)


def _choose_batch_tile(B, *, base=256, target=1024):
    """Tile the batch (lane axis) in multiples of 256, up to `target`, keeping
    >=2 grid steps whenever there are >=2 base chunks of real work so the
    'parallel' axis can shard across the two v7x TensorCores."""
    n = _round_up(B, base) // base
    return base * max(1, min(target // base, n // 2))


def dnn_forward(prepped, x_idx, *, field_num, feat_num):
    """x_idx: int32 (batch, field_num) feature indices -> (batch, 1) logits."""
    B = x_idx.shape[0]
    batch_tile = _choose_batch_tile(B)
    B_pad = _round_up(B, batch_tile)
    # Only 4 int32 indices per batch element cross into the kernel; padded
    # batch columns use index 0 and are sliced off after the call.
    idx_T = jnp.pad(x_idx.astype(jnp.int32), ((0, B_pad - B), (0, 0))).T  # (F, B_pad)
    out = dnn_pallas(idx_T, prepped["embT"], prepped["w1T"], prepped["b1T"],
                     prepped["w2T"], prepped["b2T"], prepped["w3c"], prepped["b3"],
                     batch_tile=batch_tile, field_num=field_num,
                     feat_num=feat_num)                                   # (1, B_pad)
    return out[0, :B].reshape(B, 1)


def dnn_reference(params, x_idx, field_num, latent_dim):
    """Pure-JAX reference with the same bf16-input / f32-accumulate matmuls."""
    B = x_idx.shape[0]
    x = jnp.take(params["emb"], x_idx, axis=0).reshape(B, field_num * latent_dim)
    h = jnp.dot(x.astype(jnp.bfloat16), params["w1"].astype(jnp.bfloat16),
                preferred_element_type=jnp.float32)
    h = jnp.maximum(h + params["b1"], 0.0)
    h = jnp.dot(h.astype(jnp.bfloat16), params["w2"].astype(jnp.bfloat16),
                preferred_element_type=jnp.float32)
    h = jnp.maximum(h + params["b2"], 0.0)
    return jnp.sum(h * params["w3"].T, axis=-1, keepdims=True) + params["b3"]


# -------------------------------- main ----------------------------------------
if __name__ == "__main__":
    # Hyperparameters implied by the module's opt dict (small, synthetic).
    opt = dict(
        latent_dim=8,
        feat_num=64,
        field_num=4,
        mlp_dims=[64, 32],
        mlp_dropout=0.2,   # eval-mode -> identity
        use_bn=False,
    )
    dnn_dim = opt["field_num"] * opt["latent_dim"]

    key = jax.random.PRNGKey(0)
    k_param, k_idx1, k_idx2, k_idx3 = jax.random.split(key, 4)
    params = make_dnn_params(k_param, opt["feat_num"], opt["latent_dim"],
                             dnn_dim, opt["mlp_dims"])
    prepped = prep_params_for_tpu(params)

    def check(k, batch):
        x_idx = jax.random.randint(k, (batch, opt["field_num"]), 0,
                                   opt["feat_num"], dtype=jnp.int32)
        logit = dnn_forward(prepped, x_idx, field_num=opt["field_num"],
                            feat_num=opt["feat_num"])
        jax.block_until_ready(logit)
        ref = dnn_reference(params, x_idx, opt["field_num"], opt["latent_dim"])
        assert logit.shape == (batch, 1)
        assert jnp.allclose(logit, ref, atol=1e-3, rtol=1e-2), \
            float(jnp.max(jnp.abs(logit - ref)))

    # Primary small example (single 256-wide tile, one grid step).
    check(k_idx1, 8)
    # Batch not a multiple of the tile, >1 grid step (exercises batch padding
    # and the "parallel" batch-tile axis).
    check(k_idx2, 300)
    # Larger batch: exercises the 1024-wide tile path with >=2 grid steps.
    check(k_idx3, 2048)

    print("KERNEL_OK")
</pallas_src>

<mosaic_0001>
module attributes {stable_mosaic.version = 11 : i64} {
  func.func @_dnn_kernel(%arg0: i32, %arg1: memref<4x256xi32, #tpu.memory_space<vmem>>, %arg2: memref<8x64xbf16, #tpu.memory_space<vmem>>, %arg3: memref<64x32xbf16, #tpu.memory_space<vmem>>, %arg4: memref<64x1xf32, #tpu.memory_space<vmem>>, %arg5: memref<32x64xbf16, #tpu.memory_space<vmem>>, %arg6: memref<32x1xf32, #tpu.memory_space<vmem>>, %arg7: memref<32x1xf32, #tpu.memory_space<vmem>>, %arg8: memref<1x1xf32, #tpu.memory_space<vmem>>, %arg9: memref<1x256xf32, #tpu.memory_space<vmem>>) attributes {dimension_semantics = [#tpu.dimension_semantics<parallel>], iteration_bounds = array<i64: 1>, scalar_prefetch = 0 : i64, scratch_operands = 0 : i64, tpu.core_type = #tpu.core_type<tc>, window_params = [{transform_indices = @transform_0, window_bounds = array<i64: 4, 256>}, {pipeline_mode = #tpu.pipeline_mode<synchronous>, transform_indices = @transform_1, window_bounds = array<i64: 8, 64>}, {pipeline_mode = #tpu.pipeline_mode<synchronous>, transform_indices = @transform_2, window_bounds = array<i64: 64, 32>}, {pipeline_mode = #tpu.pipeline_mode<synchronous>, transform_indices = @transform_3, window_bounds = array<i64: 64, 1>}, {pipeline_mode = #tpu.pipeline_mode<synchronous>, transform_indices = @transform_4, window_bounds = array<i64: 32, 64>}, {pipeline_mode = #tpu.pipeline_mode<synchronous>, transform_indices = @transform_5, window_bounds = array<i64: 32, 1>}, {pipeline_mode = #tpu.pipeline_mode<synchronous>, transform_indices = @transform_6, window_bounds = array<i64: 32, 1>}, {pipeline_mode = #tpu.pipeline_mode<synchronous>, transform_indices = @transform_7, window_bounds = array<i64: 1, 1>}, {transform_indices = @transform_8, window_bounds = array<i64: 1, 256>}]} {
    %c0 = arith.constant 0 : index
    %c0_0 = arith.constant 0 : index
    %0 = vector.load %arg1[%c0, %c0_0] : memref<4x256xi32, #tpu.memory_space<vmem>>, vector<4x256xi32>
    %c0_1 = arith.constant 0 : index
    %c0_2 = arith.constant 0 : index
    %1 = vector.load %arg2[%c0_1, %c0_2] : memref<8x64xbf16, #tpu.memory_space<vmem>>, vector<8x64xbf16>
    %2 = tpu.iota {dimensions = array<i32: 0>} : vector<64x256xi32>
    %3 = vector.extract_strided_slice %0 {offsets = [0, 0], sizes = [1, 256], strides = [1, 1]} : vector<4x256xi32> to vector<1x256xi32>
    %4 = vector.broadcast %3 : vector<1x256xi32> to vector<64x256xi32>
    %5 = arith.cmpi eq, %2, %4 : vector<64x256xi32>
    %cst = arith.constant 1.000000e+00 : f32
    %cst_3 = arith.constant 0.000000e+00 : f32
    %6 = vector.broadcast %cst : f32 to vector<64x256xf32>
    %7 = vector.broadcast %cst_3 : f32 to vector<64x256xf32>
    %8 = arith.select %5, %6, %7 : vector<64x256xi1>, vector<64x256xf32>
    %9 = arith.truncf %8 : vector<64x256xf32> to vector<64x256xbf16>
    %cst_4 = arith.constant dense<0.000000e+00> : vector<8x256xf32>
    %10 = tpu.matmul %1, %9, %cst_4 {dimension_numbers = #tpu.dot_dimension_numbers<[1], [0], [0], [1], [0, 0, 1, 1], [], []>} : vector<8x64xbf16>, vector<64x256xbf16>, vector<8x256xf32> -> vector<8x256xf32>
    %11 = vector.extract_strided_slice %0 {offsets = [1, 0], sizes = [1, 256], strides = [1, 1]} : vector<4x256xi32> to vector<1x256xi32>
    %12 = vector.broadcast %11 : vector<1x256xi32> to vector<64x256xi32>
    %13 = arith.cmpi eq, %2, %12 : vector<64x256xi32>
    %cst_5 = arith.constant 1.000000e+00 : f32
    %cst_6 = arith.constant 0.000000e+00 : f32
    %14 = vector.broadcast %cst_5 : f32 to vector<64x256xf32>
    %15 = vector.broadcast %cst_6 : f32 to vector<64x256xf32>
    %16 = arith.select %13, %14, %15 : vector<64x256xi1>, vector<64x256xf32>
    %17 = arith.truncf %16 : vector<64x256xf32> to vector<64x256xbf16>
    %cst_7 = arith.constant dense<0.000000e+00> : vector<8x256xf32>
    %18 = tpu.matmul %1, %17, %cst_7 {dimension_numbers = #tpu.dot_dimension_numbers<[1], [0], [0], [1], [0, 0, 1, 1], [], []>} : vector<8x64xbf16>, vector<64x256xbf16>, vector<8x256xf32> -> vector<8x256xf32>
    %19 = vector.extract_strided_slice %0 {offsets = [2, 0], sizes = [1, 256], strides = [1, 1]} : vector<4x256xi32> to vector<1x256xi32>
    %20 = vector.broadcast %19 : vector<1x256xi32> to vector<64x256xi32>
    %21 = arith.cmpi eq, %2, %20 : vector<64x256xi32>
    %cst_8 = arith.constant 1.000000e+00 : f32
    %cst_9 = arith.constant 0.000000e+00 : f32
    %22 = vector.broadcast %cst_8 : f32 to vector<64x256xf32>
    %23 = vector.broadcast %cst_9 : f32 to vector<64x256xf32>
    %24 = arith.select %21, %22, %23 : vector<64x256xi1>, vector<64x256xf32>
    %25 = arith.truncf %24 : vector<64x256xf32> to vector<64x256xbf16>
    %cst_10 = arith.constant dense<0.000000e+00> : vector<8x256xf32>
    %26 = tpu.matmul %1, %25, %cst_10 {dimension_numbers = #tpu.dot_dimension_numbers<[1], [0], [0], [1], [0, 0, 1, 1], [], []>} : vector<8x64xbf16>, vector<64x256xbf16>, vector<8x256xf32> -> vector<8x256xf32>
    %27 = vector.extract_strided_slice %0 {offsets = [3, 0], sizes = [1, 256], strides = [1, 1]} : vector<4x256xi32> to vector<1x256xi32>
    %28 = vector.broadcast %27 : vector<1x256xi32> to vector<64x256xi32>
    %29 = arith.cmpi eq, %2, %28 : vector<64x256xi32>
    %cst_11 = arith.constant 1.000000e+00 : f32
    %cst_12 = arith.constant 0.000000e+00 : f32
    %30 = vector.broadcast %cst_11 : f32 to vector<64x256xf32>
    %31 = vector.broadcast %cst_12 : f32 to vector<64x256xf32>
    %32 = arith.select %29, %30, %31 : vector<64x256xi1>, vector<64x256xf32>
    %33 = arith.truncf %32 : vector<64x256xf32> to vector<64x256xbf16>
    %cst_13 = arith.constant dense<0.000000e+00> : vector<8x256xf32>
    %34 = tpu.matmul %1, %33, %cst_13 {dimension_numbers = #tpu.dot_dimension_numbers<[1], [0], [0], [1], [0, 0, 1, 1], [], []>} : vector<8x64xbf16>, vector<64x256xbf16>, vector<8x256xf32> -> vector<8x256xf32>
    %35 = tpu.concatenate %10, %18, %26, %34 in 0 : vector<8x256xf32>, vector<8x256xf32>, vector<8x256xf32>, vector<8x256xf32> -> vector<32x256xf32>
    %36 = arith.truncf %35 : vector<32x256xf32> to vector<32x256xbf16>
    %c0_14 = arith.constant 0 : index
    %c0_15 = arith.constant 0 : index
    %37 = vector.load %arg3[%c0_14, %c0_15] : memref<64x32xbf16, #tpu.memory_space<vmem>>, vector<64x32xbf16>
    %cst_16 = arith.constant dense<0.000000e+00> : vector<64x256xf32>
    %38 = tpu.matmul %37, %36, %cst_16 {dimension_numbers = #tpu.dot_dimension_numbers<[1], [0], [0], [1], [0, 0, 1, 1], [], []>} : vector<64x32xbf16>, vector<32x256xbf16>, vector<64x256xf32> -> vector<64x256xf32>
    %c0_17 = arith.constant 0 : index
    %c0_18 = arith.constant 0 : index
    %39 = vector.load %arg4[%c0_17, %c0_18] : memref<64x1xf32, #tpu.memory_space<vmem>>, vector<64x1xf32>
    %40 = vector.broadcast %39 : vector<64x1xf32> to vector<64x256xf32>
    %41 = arith.addf %38, %40 : vector<64x256xf32>
    %cst_19 = arith.constant 0.000000e+00 : f32
    %42 = vector.broadcast %cst_19 : f32 to vector<64x256xf32>
    %43 = arith.maximumf %41, %42 : vector<64x256xf32>
    %c0_20 = arith.constant 0 : index
    %c0_21 = arith.constant 0 : index
    %44 = vector.load %arg5[%c0_20, %c0_21] : memref<32x64xbf16, #tpu.memory_space<vmem>>, vector<32x64xbf16>
    %45 = arith.truncf %43 : vector<64x256xf32> to vector<64x256xbf16>
    %cst_22 = arith.constant dense<0.000000e+00> : vector<32x256xf32>
    %46 = tpu.matmul %44, %45, %cst_22 {dimension_numbers = #tpu.dot_dimension_numbers<[1], [0], [0], [1], [0, 0, 1, 1], [], []>} : vector<32x64xbf16>, vector<64x256xbf16>, vector<32x256xf32> -> vector<32x256xf32>
    %c0_23 = arith.constant 0 : index
    %c0_24 = arith.constant 0 : index
    %47 = vector.load %arg6[%c0_23, %c0_24] : memref<32x1xf32, #tpu.memory_space<vmem>>, vector<32x1xf32>
    %48 = vector.broadcast %47 : vector<32x1xf32> to vector<32x256xf32>
    %49 = arith.addf %46, %48 : vector<32x256xf32>
    %cst_25 = arith.constant 0.000000e+00 : f32
    %50 = vector.broadcast %cst_25 : f32 to vector<32x256xf32>
    %51 = arith.maximumf %49, %50 : vector<32x256xf32>
    %c0_26 = arith.constant 0 : index
    %c0_27 = arith.constant 0 : index
    %52 = vector.load %arg7[%c0_26, %c0_27] : memref<32x1xf32, #tpu.memory_space<vmem>>, vector<32x1xf32>
    %53 = vector.broadcast %52 : vector<32x1xf32> to vector<32x256xf32>
    %54 = arith.mulf %51, %53 : vector<32x256xf32>
    %cst_28 = arith.constant dense<0.000000e+00> : vector<256xf32>
    %55 = vector.multi_reduction <add>, %54, %cst_28 [0] : vector<32x256xf32> to vector<256xf32>
    %56 = vector.shape_cast %55 : vector<256xf32> to vector<1x256xf32>
    %c0_29 = arith.constant 0 : index
    %c0_30 = arith.constant 0 : index
    %57 = vector.load %arg8[%c0_29, %c0_30] : memref<1x1xf32, #tpu.memory_space<vmem>>, vector<1x1xf32>
    %58 = vector.broadcast %57 : vector<1x1xf32> to vector<1x256xf32>
    %59 = arith.addf %56, %58 : vector<1x256xf32>
    %c0_31 = arith.constant 0 : index
    %c0_32 = arith.constant 0 : index
    %60 = vector.load %arg9[%c0_31, %c0_32] : memref<1x256xf32, #tpu.memory_space<vmem>>, vector<1x256xf32>
    tpu.vector_store %arg9[%c0_31, %c0_32], %59 {strides = array<i32>} : memref<1x256xf32, #tpu.memory_space<vmem>>, vector<1x256xf32>,
    return
  }
  func.func @transform_0(%arg0: i32) -> (i32, i32) {
    %c0_i32 = arith.constant 0 : i32
    %c0_i32_0 = arith.constant 0 : i32
    return %c0_i32, %arg0 : i32, i32
  }
  func.func @transform_1(%arg0: i32) -> (i32, i32) {
    %c0_i32 = arith.constant 0 : i32
    %c0_i32_0 = arith.constant 0 : i32
    %c0_i32_1 = arith.constant 0 : i32
    return %c0_i32, %c0_i32_0 : i32, i32
  }
  func.func @transform_2(%arg0: i32) -> (i32, i32) {
    %c0_i32 = arith.constant 0 : i32
    %c0_i32_0 = arith.constant 0 : i32
    %c0_i32_1 = arith.constant 0 : i32
    return %c0_i32, %c0_i32_0 : i32, i32
  }
  func.func @transform_3(%arg0: i32) -> (i32, i32) {
    %c0_i32 = arith.constant 0 : i32
    %c0_i32_0 = arith.constant 0 : i32
    %c0_i32_1 = arith.constant 0 : i32
    return %c0_i32, %c0_i32_0 : i32, i32
  }
  func.func @transform_4(%arg0: i32) -> (i32, i32) {
    %c0_i32 = arith.constant 0 : i32
    %c0_i32_0 = arith.constant 0 : i32
    %c0_i32_1 = arith.constant 0 : i32
    return %c0_i32, %c0_i32_0 : i32, i32
  }
  func.func @transform_5(%arg0: i32) -> (i32, i32) {
    %c0_i32 = arith.constant 0 : i32
    %c0_i32_0 = arith.constant 0 : i32
    %c0_i32_1 = arith.constant 0 : i32
    return %c0_i32, %c0_i32_0 : i32, i32
  }
  func.func @transform_6(%arg0: i32) -> (i32, i32) {
    %c0_i32 = arith.constant 0 : i32
    %c0_i32_0 = arith.constant 0 : i32
    %c0_i32_1 = arith.constant 0 : i32
    return %c0_i32, %c0_i32_0 : i32, i32
  }
  func.func @transform_7(%arg0: i32) -> (i32, i32) {
    %c0_i32 = arith.constant 0 : i32
    %c0_i32_0 = arith.constant 0 : i32
    %c0_i32_1 = arith.constant 0 : i32
    return %c0_i32, %c0_i32_0 : i32, i32
  }
  func.func @transform_8(%arg0: i32) -> (i32, i32) {
    %c0_i32 = arith.constant 0 : i32
    %c0_i32_0 = arith.constant 0 : i32
    return %c0_i32, %arg0 : i32, i32
  }
}

</mosaic_0001>

<bundles_post_ra>
// kernel: tpu_custom_call.1
= control target key start
LH: loop header
LB: loop body
LE: loop exit
PB: predicated region body
PF: predicated region fallthrough
CT: control target
= control target key end

     0   :  { %s1262_s0 = inlined_call_operand.vmem [shape: s32[4,256], index: 0, kind: input, shape index: {}]   ;;  %s1263_s1 = inlined_call_operand.vmem [shape: bf16[8,64], index: 1, kind: input, shape index: {}]   ;;  %s1264_s2 = inlined_call_operand.vmem [shape: bf16[64,32], index: 2, kind: input, shape index: {}]   ;;  %s1265_s3 = inlined_call_operand.vmem [shape: f32[64,1], index: 3, kind: input, shape index: {}]   ;;  %s1266_s4 = inlined_call_operand.vmem [shape: bf16[32,64], index: 4, kind: input, shape index: {}]   ;;  %s1267_s5 = inlined_call_operand.vmem [shape: f32[32,1], index: 5, kind: input, shape index: {}]   ;;  %s1268_s6 = inlined_call_operand.vmem [shape: f32[32,1], index: 6, kind: input, shape index: {}]   ;;  %s1269_s7 = inlined_call_operand.<no memory space> [shape: f32[1,1], index: 7, kind: input, shape index: {}]   ;;  %s1270_s8 = inlined_call_operand.hbm [shape: f32[1,256], index: 8, kind: output, shape index: {}]  }
   0x1   :  { %v13_v0 = vstv %s1269_s7 }
   0x2   :  { %14 = vst [vmem:[#allocation2] sm:$0x1] %v13_v0 }
   0x3   :  { %v879_v1 = vld [vmem:[%s1262_s0] sm:$0xff]  ;;  %v35_v2 = vlaneseq }
   0x4   :  { %v44_v3 = vperm.slane %v879_v1, 0  ;;  %v45_v4 = vperm.slane %v879_v1, 4 }
   0x5   :  { %15 = vsyncpa [#allocation4], 0  ;;  %v884_v5 = vshrl.u32 %v35_v2, 7  ;;  %v118_v14 = vperm.slane %v879_v1, 1  ;;  %v119_v15 = vperm.slane %v879_v1, 5  ;;  %v189_v20 = vperm.slane %v879_v1, 6 }
   0x6   :  { %v46_v6 = vperm.slane %v44_v3, 0  ;;  %v47_v7 = vperm.slane %v45_v4, 0  ;;  %v825_v16 = vmov 1.0|1.0   ;;  %v188_v21 = vperm.slane %v879_v1, 2  ;;  %v346_v45 = vld [vmem:[%s1265_s3 + $0x30] sm:$0xff] }
   0x7   :  { %v887_v8 = vadd.s32 48, %v884_v5  ;;  %v890_v9 = vadd.s32 56, %v884_v5  ;;  %v893_v10 = vadd.s32 32, %v884_v5  ;;  %v896_v11 = vadd.s32 40, %v884_v5  ;;  %v993_v31 = vld [vmem:[%s1263_s1] sm:$0xf] }
   0x8   :  { %v899_v12 = vadd.s32 16, %v884_v5  ;;  %v902_v13 = vadd.s32 24, %v884_v5  ;;  %v916_v17 = vadd.s32 8, %v884_v5  ;;  %v921_v18 = vperm.slane %v118_v14, 1  ;;  %v344_v49 = vld [vmem:[%s1265_s3 + $0x20] sm:$0xff]  ;;  %v347_v50 = vld [vmem:[%s1265_s3 + $0x38] sm:$0xff] }
   0x9   :  { %vm60_vm0 = vcmp.eq.s32.totalorder %v887_v8, %v46_v6  ;;  %vm62_vm1 = vcmp.eq.s32.totalorder %v890_v9, %v46_v6  ;;  %vm61_vm2 = vcmp.eq.s32.totalorder %v887_v8, %v47_v7  ;;  %vm63_vm3 = vcmp.eq.s32.totalorder %v890_v9, %v47_v7  ;;  %v345_v54 = vld [vmem:[%s1265_s3 + $0x28] sm:$0xff]  ;;  %v340_v57 = vld [vmem:[%s1265_s3] sm:$0xff]  ;;  %v596_v14 = vld [vmem:[%s1268_s6 + $0x18] sm:$0xff]  ;;  %s670_s26 = sshll.u32 %s1270_s8, 4  ;;  %s671_s26 = int_to_ptr.hbm [resolvable:$true] %s670_s26 }
   0xa   :  { %vm679_vm4 = vmpackc.low %vm62_vm1, %vm60_vm0  ;;  %vm56_vm5 = vcmp.eq.s32.totalorder %v893_v10, %v46_v6  ;;  %vm58_vm6 = vcmp.eq.s32.totalorder %v896_v11, %v46_v6  ;;  %vm57_vm7 = vcmp.eq.s32.totalorder %v893_v10, %v47_v7  ;;  %vm59_vm8 = vcmp.eq.s32.totalorder %v896_v11, %v47_v7  ;;  %v341_v60 = vld [vmem:[%s1265_s3 + $0x8] sm:$0xff]  ;;  %v787_v4 = vld [vmem:[%s1264_s2] sm:$0xff] }
   0xb   :  { %680 = vmatpush.bf16.msk.msra.mxu2 %vm679_vm4, %v825_v16  ;;  %vm688_vm9 = vmpackc.low %vm63_vm3, %vm61_vm2  ;;  %vm52_vm12 = vcmp.eq.s32.totalorder %v899_v12, %v46_v6  ;;  %vm54_vm13 = vcmp.eq.s32.totalorder %v902_v13, %v46_v6  ;;  %vm53_vm14 = vcmp.eq.s32.totalorder %v899_v12, %v47_v7  ;;  %vm55_vm15 = vcmp.eq.s32.totalorder %v902_v13, %v47_v7 }
   0xc   :  { %689 = vmatpush.bf16.msk.msra.mxu3 %vm688_vm9, %v825_v16  ;;  %vm681_vm10 = vmpackc.low %vm58_vm6, %vm56_vm5  ;;  %v925_v19 = vperm.slane %v119_v15, 1  ;;  %vm48_vm0 = vcmp.eq.s32.totalorder %v884_v5, %v46_v6  ;;  %vm50_vm1 = vcmp.eq.s32.totalorder %v916_v17, %v46_v6  ;;  %vm49_vm3 = vcmp.eq.s32.totalorder %v884_v5, %v47_v7  ;;  %v789_v15 = vld [vmem:[%s1264_s2 + $0x10] sm:$0xff] }
   0xd   :  { %vm690_vm11 = vmpackc.low %vm59_vm8, %vm57_vm7  ;;  %vm51_vm4 = vcmp.eq.s32.totalorder %v916_v17, %v47_v7  ;;  %vm134_vm6 = vcmp.eq.s32.totalorder %v887_v8, %v921_v18  ;;  %vm136_vm7 = vcmp.eq.s32.totalorder %v890_v9, %v921_v18  ;;  %v956_v24 = vperm.slane %v189_v20, 2  ;;  %v508_v7 = vld [vmem:[%s1267_s5 + $0x8] sm:$0xff]  ;;  %v595_v20 = vld [vmem:[%s1268_s6 + $0x10] sm:$0xff] }
   0xe   :  { %vm683_vm2 = vmpackc.low %vm54_vm13, %vm52_vm12  ;;  %vm135_vm9 = vcmp.eq.s32.totalorder %v887_v8, %v925_v19  ;;  %vm130_vm12 = vcmp.eq.s32.totalorder %v893_v10, %v921_v18  ;;  %vm132_vm13 = vcmp.eq.s32.totalorder %v896_v11, %v921_v18  ;;  %v967_v26 = vperm.slane %v188_v21, 2 }
   0xf   :  { %682 = vmatpush.bf16.msk.msra.mxu2 %vm681_vm10, %v825_v16  ;;  %vm692_vm5 = vmpackc.low %vm55_vm15, %vm53_vm14  ;;  %vm137_vm10 = vcmp.eq.s32.totalorder %v890_v9, %v925_v19  ;;  %vm131_vm15 = vcmp.eq.s32.totalorder %v893_v10, %v925_v19  ;;  %v258_v28 = vperm.slane %v879_v1, 3  ;;  %v259_v30 = vperm.slane %v879_v1, 7 }
  0x10   :  { %691 = vmatpush.bf16.msk.msra.mxu3 %vm690_vm11, %v825_v16  ;;  %vm939_vm8 = vmpackc.low %vm50_vm1, %vm48_vm0  ;;  %vm133_vm0 = vcmp.eq.s32.totalorder %v896_v11, %v925_v19  ;;  %v1286_v34 = vmov 0  ;;  %v1296_v40 = vmov 0  ;;  %v826_v44 = vmov 0  }
  0x11   :  { %vm948_vm11 = vmpackc.low %vm51_vm4, %vm49_vm3  ;;  %vm128_vm3 = vcmp.eq.s32.totalorder %v902_v13, %v921_v18  ;;  %v1034_v35 = vperm.slane %v258_v28, 3  ;;  %v1045_v36 = vperm.slane %v259_v30, 3  ;;  %797 = vset.pattern.permute.xlu1 %v826_v44  ;;  %796 = vset.pattern.permute.xlu0 %v826_v44 }
  0x12   :  { %vm959_vm14 = vmpackc.low %vm136_vm7, %vm134_vm6  ;;  %vm129_vm6 = vcmp.eq.s32.totalorder %v902_v13, %v925_v19  ;;  %vm1271_vm7 = vcmask 523264   ;;  %380 = vperm.xlu0 %796, %v346_v45   ;;  %798 = vset.pattern.permute.xlu2 %v826_v44 }
  0x13   :  { %684 = vmatpush.bf16.msk.msra.mxu2 %vm683_vm2, %v825_v16  ;;  %vm969_vm1 = vmpackc.low %vm137_vm10, %vm135_vm9  ;;  %vm126_vm2 = vcmp.eq.s32.totalorder %v899_v12, %v921_v18  ;;  %vm205_vm10 = vcmp.eq.s32.totalorder %v887_v8, %v956_v24  ;;  %370 = vperm.xlu1 %797, %v344_v49  }
  0x14   :  { %693 = vmatpush.bf16.msk.msra.mxu3 %vm692_vm5, %v825_v16  ;;  %vm978_vm4 = vmpackc.low %vm132_vm13, %vm130_vm12  ;;  %vm127_vm5 = vcmp.eq.s32.totalorder %v899_v12, %v925_v19  ;;  %vm207_vm12 = vcmp.eq.s32.totalorder %v890_v9, %v956_v24  ;;  %vm204_vm13 = vcmp.eq.s32.totalorder %v887_v8, %v967_v26 }
  0x15   :  { %vm995_vm9 = vmpackc.low %vm133_vm0, %vm131_vm15  ;;  %vm206_vm15 = vcmp.eq.s32.totalorder %v890_v9, %v967_v26  ;;  %vm124_vm0 = vcmp.eq.s32.totalorder %v916_v17, %v921_v18 }
  0x17   :  { %686 = vmatpush.bf16.msk.msra.mxu2 %vm939_vm8, %v825_v16  ;;  %vm1012_vm8 = vmpackc.low %vm128_vm3, %vm126_vm2  ;;  %vm125_vm2 = vcmp.eq.s32.totalorder %v916_v17, %v925_v19 }
  0x18   :  { %695 = vmatpush.bf16.msk.msra.mxu3 %vm948_vm11, %v825_v16  ;;  %vm1026_vm11 = vmpackc.low %vm129_vm6, %vm127_vm5  ;;  %vm201_vm6 = vcmp.eq.s32.totalorder %v893_v10, %v956_v24 }
  0x19   :  { %v1287_v34 = vsel %vm1026_vm11, 4294967295, %v1286_v34  ;;  %vm724_vm3 = vmpackc.low %vm207_vm12, %vm205_vm10  ;;  %vm200_vm10 = vcmp.eq.s32.totalorder %v893_v10, %v967_v26  ;;  %vm202_vm12 = vcmp.eq.s32.totalorder %v896_v11, %v967_v26 }
  0x1a   :  { %687 = vmatmul.msk.bf16.vlgmr.msra.gmra.mxu2 %vm1271_vm7, %v993_v31  ;;  %725 = vmatpush.bf16.msk.msra.mxu1 %vm724_vm3, %v825_v16  ;;  %vm715_vm5 = vmpackc.low %vm206_vm15, %vm204_vm13  ;;  %vm1290_vm13 = vcmp.eq.s32.totalorder %v884_v5, %v925_v19  ;;  %vm274_vm15 = vcmp.eq.s32.totalorder %v887_v8, %v1034_v35  ;;  %vm277_vm3 = vcmp.eq.s32.totalorder %v890_v9, %v1045_v36  ;;  %v790_v19 = vld [vmem:[%s1264_s2 + $0x18] sm:$0xff] }
  0x1b   :  { %698 = vmatpush.bf16.msk.msrb.mxu2 %vm959_vm14, %v825_v16  ;;  %vm122_vm14 = vcmp.eq.s32.totalorder %v884_v5, %v921_v18  ;;  %696 = vmatmul.msk.bf16.vlgmr.msra.gmra.mxu3 %vm1271_vm7, %v993_v31  ;;  %v510_v18 = vld [vmem:[%s1267_s5 + $0x18] sm:$0xff] }
  0x1c   :  { %707 = vmatpush.bf16.msk.msrb.mxu3 %vm969_vm1, %v825_v16  ;;  %vm203_vm1 = vcmp.eq.s32.totalorder %v896_v11, %v956_v24  ;;  %vm1057_vm11 = vmpackc.low %vm124_vm0, %vm122_vm14  ;;  %716 = vmatpush.bf16.msk.msra.mxu0 %vm715_vm5, %v825_v16  ;;  %vm276_vm14 = vcmp.eq.s32.totalorder %v890_v9, %v1034_v35  ;;  %vm275_vm0 = vcmp.eq.s32.totalorder %v887_v8, %v1045_v36  ;;  %v788_v8 = vld [vmem:[%s1264_s2 + $0x8] sm:$0xff]  ;;  %v509_v9 = vld [vmem:[%s1267_s5 + $0x10] sm:$0xff] }
  0x1d   :  { %vm717_vm5 = vmpackc.low %vm202_vm12, %vm200_vm10  ;;  %vm1295_vm10 = vnez %v1287_v34  ;;  %385 = vperm.xlu0 %796, %v347_v50   ;;  %375 = vperm.xlu1 %797, %v345_v54  }
  0x1e   :  { %vm1092_vm7 = vmpackc.low %vm276_vm14, %vm274_vm15  ;;  %vm272_vm15 = vcmp.eq.s32.totalorder %v896_v11, %v1034_v35  ;;  %vm271_vm14 = vcmp.eq.s32.totalorder %v893_v10, %v1045_v36 }
  0x1f   :  { %700 = vmatpush.bf16.msk.msrb.mxu2 %vm978_vm4, %v825_v16  ;;  %vm1072_vm4 = vmpackc.low %vm125_vm2, %vm1290_vm13  ;;  %vm197_vm2 = vcmp.eq.s32.totalorder %v899_v12, %v956_v24  ;;  %vm199_vm13 = vcmp.eq.s32.totalorder %v902_v13, %v956_v24 }
  0x20   :  { %709 = vmatpush.bf16.msk.msrb.mxu3 %vm995_vm9, %v825_v16  ;;  %vm726_vm9 = vmpackc.low %vm203_vm1, %vm201_vm6  ;;  %718 = vmatpush.bf16.msk.msra.mxu0 %vm717_vm5, %v825_v16  ;;  %vm196_vm1 = vcmp.eq.s32.totalorder %v899_v12, %v967_v26  ;;  %vm198_vm6 = vcmp.eq.s32.totalorder %v902_v13, %v967_v26 }
  0x21   :  { %727 = vmatpush.bf16.msk.msra.mxu1 %vm726_vm9, %v825_v16  ;;  %vm1104_vm12 = vmpackc.low %vm277_vm3, %vm275_vm0  ;;  %vm273_vm9 = vcmp.eq.s32.totalorder %v896_v11, %v1045_v36  ;;  %vm193_vm0 = vcmp.eq.s32.totalorder %v884_v5, %v956_v24  ;;  %vm195_vm3 = vcmp.eq.s32.totalorder %v916_v17, %v956_v24  ;;  %v593_v11 = vld [vmem:[%s1268_s6] sm:$0xff] }
  0x22   :  { %v1297_v40 = vsel %vm1104_vm12, 4294967295, %v1296_v40  ;;  %vm728_vm5 = vmpackc.low %vm199_vm13, %vm197_vm2  ;;  %vm192_vm2 = vcmp.eq.s32.totalorder %v884_v5, %v967_v26  ;;  %vm194_vm13 = vcmp.eq.s32.totalorder %v916_v17, %v967_v26 }
  0x23   :  { %702 = vmatpush.bf16.msk.msrb.mxu2 %vm1012_vm8, %v825_v16  ;;  %vm270_vm8 = vcmp.eq.s32.totalorder %v893_v10, %v1034_v35  ;;  %v342_v10 = vld [vmem:[%s1265_s3 + $0x10] sm:$0xff] }
  0x24   :  { %711 = vmatpush.bf16.msk.msrb.mxu3 %vm1295_vm10, %v825_v16  ;;  %vm719_vm10 = vmpackc.low %vm198_vm6, %vm196_vm1  ;;  %vm1300_vm1 = vnez %v1297_v40  ;;  %360 = vperm.xlu2 %798, %v342_v10  }
  0x25   :  { %729 = vmatpush.bf16.msk.msra.mxu1 %vm728_vm5, %v825_v16  ;;  %vm1124_vm12 = vmpackc.low %vm272_vm15, %vm270_vm8  ;;  %720 = vmatpush.bf16.msk.msra.mxu0 %vm719_vm10, %v825_v16  ;;  %vm266_vm8 = vcmp.eq.s32.totalorder %v899_v12, %v1034_v35  ;;  %vm268_vm15 = vcmp.eq.s32.totalorder %v902_v13, %v1034_v35 }
  0x26   :  { %vm730_vm6 = vmpackc.low %vm195_vm3, %vm193_vm0  ;;  %vm262_vm3 = vcmp.eq.s32.totalorder %v884_v5, %v1034_v35  ;;  %350 = vperm.xlu0 %796, %v340_v57   ;;  %355 = vperm.xlu1 %797, %v341_v60  }
  0x27   :  { %704 = vmatpush.bf16.msk.msrb.mxu2 %vm1057_vm11, %v825_v16  ;;  %vm744_vm11 = vmpackc.low %vm273_vm9, %vm271_vm14  ;;  %vm1301_vm14 = vcmask 523264  }
  0x28   :  { %713 = vmatpush.bf16.msk.msrb.mxu3 %vm1072_vm4, %v825_v16  ;;  %vm721_vm5 = vmpackc.low %vm194_vm13, %vm192_vm2  ;;  %vm267_vm4 = vcmp.eq.s32.totalorder %v899_v12, %v1045_v36  ;;  %vm264_vm2 = vcmp.eq.s32.totalorder %v916_v17, %v1034_v35  ;;  %v594_v12 = vld [vmem:[%s1268_s6 + $0x8] sm:$0xff] }
  0x29   :  { %731 = vmatpush.bf16.msk.msra.mxu1 %vm730_vm6, %v825_v16  ;;  %722 = vmatpush.bf16.msk.msra.mxu0 %vm721_vm5, %v825_v16  ;;  %vm737_vm9 = vmpackc.low %vm268_vm15, %vm266_vm8 }
  0x2a   :  { %705 = vmatmul.msk.bf16.vlgmr.msrb.gmra.mxu2 %vm1301_vm14, %v993_v31  ;;  %vm1302_vm10 = vmmov %vm1301_vm14 }
  0x2b   :  { %734 = vmatpush.bf16.msk.msra.mxu2 %vm1092_vm7, %v825_v16  ;;  %vm269_vm7 = vcmp.eq.s32.totalorder %v902_v13, %v1045_v36  ;;  %714 = vmatmul.msk.bf16.vlgmr.msrb.gmra.mxu3 %vm1302_vm10, %v993_v31  ;;  %vm1303_vm13 = vmmov %vm1302_vm10  ;;  %v343_v13 = vld [vmem:[%s1265_s3 + $0x18] sm:$0xff] }
  0x2c   :  { %743 = vmatpush.bf16.msk.msra.mxu3 %vm1300_vm1, %v825_v16  ;;  %vm746_vm0 = vmpackc.low %vm269_vm7, %vm267_vm4  ;;  %732 = vmatmul.msk.bf16.vlgmr.msra.gmra.mxu1 %vm1303_vm13, %v993_v31  ;;  %vm408_vm4 = vcmask 261120  }
  0x2d   :  { %vm1304_vm1 = vmmov %vm1302_vm10  ;;  %365 = vperm.xlu2 %798, %v343_v13  }
  0x2e   :  { %723 = vmatmul.msk.bf16.vlgmr.msra.gmra.mxu0 %vm1304_vm1, %v993_v31  ;;  %vm739_vm6 = vmpackc.low %vm264_vm2, %vm262_vm3  ;;  %518 = vperm.xlu0 %796, %v508_v7   ;;  %vm660_vm3 = vcmp.lt.s32.totalorder %v35_v2, 256 }
  0x2f   :  { %736 = vmatpush.bf16.msk.msra.mxu2 %vm1124_vm12, %v825_v16  ;;  %vm263_vm12 = vcmp.eq.s32.totalorder %v884_v5, %v1045_v36  ;;  %vm1305_vm15 = vmmov %vm1304_vm1  ;;  %523 = vperm.xlu1 %797, %v509_v9  }
  0x30   :  { %745 = vmatpush.bf16.msk.msra.mxu3 %vm744_vm11, %v825_v16  ;;  %vm265_vm11 = vcmp.eq.s32.totalorder %v916_v17, %v1045_v36  ;;  %vm1306_vm5 = vmmov %vm1304_vm1  ;;  %v507_v17 = vld [vmem:[%s1267_s5] sm:$0xff] }
  0x31   :  { %vm748_vm8 = vmpackc.low %vm265_vm11, %vm263_vm12 }
  0x32   :  { %vm1307_vm7 = vmmov %vm1304_vm1 }
  0x33   :  { %738 = vmatpush.bf16.msk.msra.mxu2 %vm737_vm9, %v825_v16  ;;  %vm1308_vm14 = vmmov %vm1304_vm1 }
  0x34   :  { %747 = vmatpush.bf16.msk.msra.mxu3 %vm746_vm0, %v825_v16  ;;  %vm1309_vm9 = vmmov %vm1304_vm1  ;;  %vm655_vm0 = vcmask 1040384  }
  0x35   :  { %513 = vperm.xlu2 %798, %v507_v17   ;;  %vm1310_vm10 = vmmov %vm1304_vm1 }
  0x36   :  { %599 = vperm.xlu0 %796, %v593_v11  }
  0x37   :  { %740 = vmatpush.bf16.msk.msra.mxu2 %vm739_vm6, %v825_v16  ;;  %604 = vperm.xlu1 %797, %v594_v12  }
  0x38   :  { %749 = vmatpush.bf16.msk.msra.mxu3 %vm748_vm8, %v825_v16  ;;  %v643_v16 = vld [vmem:[#allocation2] sm:$0x1] }
  0x3a   :  { %741 = vmatmul.msk.bf16.vlgmr.msra.gmra.mxu2 %vm1305_vm15, %v993_v31 }
  0x3b   :  { %750 = vmatmul.msk.bf16.vlgmr.msra.gmra.mxu3 %vm1306_vm5, %v993_v31 }
  0x3d   :  { %528 = vperm.xlu2 %798, %v510_v18  }
  0x3e   :  { %614 = vperm.xlu0 %796, %v596_v14  }
  0x3f   :  { %646 = vperm.xlu1 %797, %v643_v16  }
  0x45   :  { %609 = vperm.xlu2 %798, %v595_v20  }
  0x7e   :  { %v361_v35 = vpop.permute.xlu2 %360 }
  0x84   :  { %v381_v34 = vpop.permute.xlu0 %380 }
  0x85   :  { %v371_v33 = vpop.permute.xlu1 %370 }
  0x8f   :  { %v376_v38 = vpop.permute.xlu1 %375  ;;  %v386_v39 = vpop.permute.xlu0 %385 }
  0x9d   :  { %v101_v42 = vpop.f32.mrf.mxu2 }
  0x9e   :  { %v114_v43 = vpop.f32.mrf.mxu3 }
  0xa5   :  { %v103_v46 = vpop.f32.mrf.mxu2 }
  0xa6   :  { %v116_v47 = vpop.f32.mrf.mxu3  ;;  %v366_v46 = vpop.permute.xlu2 %365 }
  0xa9   :  { %v254_v48 = vpop.f32.mrf.mxu1 }
  0xab   :  { %v241_v51 = vpop.f32.mrf.mxu0 }
  0xad   :  { %v171_v52 = vpop.f32.mrf.mxu2 }
  0xae   :  { %v184_v53 = vpop.f32.mrf.mxu3  ;;  %v328_v1 = vpack.c.bf16 %v171_v52, %v101_v42 }
  0xaf   :  { %v329_v3 = vpack.c.bf16 %v184_v53, %v114_v43 }
  0xb1   :  { %v256_v55 = vpop.f32.mrf.mxu1 }
  0xb3   :  { %v243_v56 = vpop.f32.mrf.mxu0 }
  0xb5   :  { %v173_v58 = vpop.f32.mrf.mxu2 }
  0xb6   :  { %v186_v59 = vpop.f32.mrf.mxu3  ;;  %v356_v58 = vpop.permute.xlu1 %355 }
  0xbd   :  { %v311_v61 = vpop.f32.mrf.mxu2 }
  0xbe   :  { %v330_v62 = vpack.c.bf16 %v311_v61, %v241_v51  ;;  %v324_v63 = vpop.f32.mrf.mxu3 }
  0xbf   :  { %v331_v0 = vpack.c.bf16 %v324_v63, %v254_v48 }
  0xc0   :  { %427 = vmatpush.bf16.msrb.mxu0 %v330_v62 }
  0xc1   :  { %456 = vmatpush.bf16.msrb.mxu1 %v331_v0 }
  0xc4   :  { %428 = vmatpush.bf16.msrb.mxu0 %v328_v1 }
  0xc5   :  { %457 = vmatpush.bf16.msrb.mxu1 %v329_v3  ;;  %v313_v5 = vpop.f32.mrf.mxu2  ;;  %v351_v3 = vpop.permute.xlu0 %350 }
  0xc6   :  { %v326_v6 = vpop.f32.mrf.mxu3 }
  0xc7   :  { %767 = vmatmul.msk.bf16.vlgmr.msrb.gmra.mxu0 %vm408_vm4, %v787_v4 }
  0xc8   :  { %771 = vmatmul.msk.bf16.vlgmr.msrb.gmra.mxu1 %vm408_vm4, %v787_v4 }
  0xd7   :  { %768 = vmatmul.msk.bf16.gmra.mxu0 %vm408_vm4, %v788_v8 }
  0xd8   :  { %772 = vmatmul.msk.bf16.gmra.mxu1 %vm408_vm4, %v788_v8 }
  0xe7   :  { %769 = vmatmul.msk.bf16.gmra.mxu0 %vm408_vm4, %v789_v15 }
  0xe8   :  { %773 = vmatmul.msk.bf16.gmra.mxu1 %vm408_vm4, %v789_v15 }
  0xf7   :  { %770 = vmatmul.msk.bf16.gmra.mxu0 %vm408_vm4, %v790_v19 }
  0xf8   :  { %774 = vmatmul.msk.bf16.gmra.mxu1 %vm408_vm4, %v790_v19 }
 0x144   :  { %v430_v21 = vpop.f32.mrf.mxu0 }
 0x145   :  { %v459_v22 = vpop.f32.mrf.mxu1  ;;  %v431_v10 = vadd.f32 %v430_v21, %v351_v3  ;;  %v792_v21 = vld [vmem:[%s1266_s4 + $0x8] sm:$0xff] }
 0x146   :  { %v460_v12 = vadd.f32 %v459_v22, %v351_v3 }
 0x147   :  { %v479_v18 = vmax.f32 %v431_v10, 0.0 }
 0x148   :  { %v480_v19 = vmax.f32 %v460_v12, 0.0 }
 0x14c   :  { %v432_v23 = vpop.f32.mrf.mxu0 }
 0x14d   :  { %v461_v24 = vpop.f32.mrf.mxu1  ;;  %v433_v4 = vadd.f32 %v432_v23, %v356_v58 }
 0x14e   :  { %v462_v7 = vadd.f32 %v461_v24, %v356_v58  ;;  %v791_v24 = vld [vmem:[%s1266_s4] sm:$0xff]  ;;  %s827_s4 = smov [#allocation3]  }
 0x14f   :  { %v481_v14 = vmax.f32 %v433_v4, 0.0  ;;  %s668_s23 = sshll.u32 %s827_s4, 4  ;;  %s669_s23 = int_to_ptr.vmem [resolvable:$true] %s668_s23 }
 0x150   :  { %v482_v16 = vmax.f32 %v462_v7, 0.0 }
 0x151   :  { %v499_v20 = vpack.c.bf16 %v481_v14, %v479_v18 }
 0x152   :  { %v500_v23 = vpack.c.bf16 %v482_v16, %v480_v19 }
 0x154   :  { %v435_v25 = vpop.f32.mrf.mxu0 }
 0x155   :  { %v464_v26 = vpop.f32.mrf.mxu1  ;;  %v436_v62 = vadd.f32 %v435_v25, %v361_v35 }
 0x156   :  { %v465_v0 = vadd.f32 %v464_v26, %v361_v35  ;;  %v514_v26 = vpop.permute.xlu2 %513 }
 0x157   :  { %v483_v11 = vmax.f32 %v436_v62, 0.0 }
 0x158   :  { %v484_v13 = vmax.f32 %v465_v0, 0.0 }
 0x15c   :  { %v437_v27 = vpop.f32.mrf.mxu0 }
 0x15d   :  { %v466_v28 = vpop.f32.mrf.mxu1  ;;  %v438_v55 = vadd.f32 %v437_v27, %v366_v46  ;;  %v519_v27 = vpop.permute.xlu0 %518 }
 0x15e   :  { %v467_v59 = vadd.f32 %v466_v28, %v366_v46 }
 0x15f   :  { %v485_v5 = vmax.f32 %v438_v55, 0.0 }
 0x160   :  { %v486_v8 = vmax.f32 %v467_v59, 0.0 }
 0x161   :  { %v501_v15 = vpack.c.bf16 %v485_v5, %v483_v11 }
 0x162   :  { %v502_v17 = vpack.c.bf16 %v486_v8, %v484_v13 }
 0x164   :  { %v440_v29 = vpop.f32.mrf.mxu0 }
 0x165   :  { %v469_v30 = vpop.f32.mrf.mxu1  ;;  %v441_v49 = vadd.f32 %v440_v29, %v371_v33 }
 0x166   :  { %v470_v52 = vadd.f32 %v469_v30, %v371_v33  ;;  %v524_v30 = vpop.permute.xlu1 %523 }
 0x167   :  { %v487_v63 = vmax.f32 %v441_v49, 0.0 }
 0x168   :  { %v488_v1 = vmax.f32 %v470_v52, 0.0 }
 0x16c   :  { %v442_v31 = vpop.f32.mrf.mxu0 }
 0x16d   :  { %v471_v32 = vpop.f32.mrf.mxu1  ;;  %v443_v43 = vadd.f32 %v442_v31, %v376_v38  ;;  %v529_v31 = vpop.permute.xlu2 %528 }
 0x16e   :  { %v472_v47 = vadd.f32 %v471_v32, %v376_v38  ;;  %v600_v38 = vpop.permute.xlu0 %599 }
 0x16f   :  { %v489_v56 = vmax.f32 %v443_v43, 0.0 }
 0x170   :  { %v490_v60 = vmax.f32 %v472_v47, 0.0 }
 0x171   :  { %v503_v6 = vpack.c.bf16 %v489_v56, %v487_v63 }
 0x172   :  { %v504_v9 = vpack.c.bf16 %v490_v60, %v488_v1 }
 0x174   :  { %v445_v36 = vpop.f32.mrf.mxu0 }
 0x175   :  { %v474_v37 = vpop.f32.mrf.mxu1  ;;  %v446_v40 = vadd.f32 %v445_v36, %v381_v34  ;;  %v610_v49 = vpop.permute.xlu2 %609 }
 0x176   :  { %v475_v41 = vadd.f32 %v474_v37, %v381_v34 }
 0x177   :  { %v491_v50 = vmax.f32 %v446_v40, 0.0 }
 0x178   :  { %v492_v53 = vmax.f32 %v475_v41, 0.0 }
 0x17c   :  { %v447_v42 = vpop.f32.mrf.mxu0 }
 0x17d   :  { %v448_v44 = vadd.f32 %v447_v42, %v386_v39  ;;  %v476_v45 = vpop.f32.mrf.mxu1 }
 0x17e   :  { %v477_v48 = vadd.f32 %v476_v45, %v386_v39  ;;  %v605_v45 = vpop.permute.xlu1 %604 }
 0x17f   :  { %v493_v51 = vmax.f32 %v448_v44, 0.0 }
 0x180   :  { %v494_v54 = vmax.f32 %v477_v48, 0.0 }
 0x181   :  { %v505_v57 = vpack.c.bf16 %v493_v51, %v491_v50 }
 0x182   :  { %v506_v61 = vpack.c.bf16 %v494_v54, %v492_v53 }
 0x183   :  { %551 = vmatpush.bf16.msrb.mxu2 %v505_v57 }
 0x184   :  { %570 = vmatpush.bf16.msrb.mxu3 %v506_v61  ;;  %v615_v61 = vpop.permute.xlu0 %614 }
 0x187   :  { %552 = vmatpush.bf16.msrb.mxu2 %v503_v6 }
 0x188   :  { %571 = vmatpush.bf16.msrb.mxu3 %v504_v9 }
 0x18b   :  { %553 = vmatpush.bf16.msrb.mxu2 %v501_v15  ;;  %v647_v15 = vpop.permute.xlu1 %646 }
 0x18c   :  { %572 = vmatpush.bf16.msrb.mxu3 %v502_v17  ;;  %v649_v18 = vperm.slane %v647_v15, 0 }
 0x18f   :  { %554 = vmatpush.bf16.msrb.mxu2 %v499_v20 }
 0x190   :  { %573 = vmatpush.bf16.msrb.mxu3 %v500_v23 }
 0x192   :  { %783 = vmatmul.msk.bf16.vlgmr.msrb.gmra.mxu2 %vm1307_vm7, %v791_v24 }
 0x193   :  { %785 = vmatmul.msk.bf16.vlgmr.msrb.gmra.mxu3 %vm1308_vm14, %v791_v24 }
 0x1a2   :  { %784 = vmatmul.msk.bf16.gmra.mxu2 %vm1309_vm9, %v792_v21 }
 0x1a3   :  { %786 = vmatmul.msk.bf16.gmra.mxu3 %vm1310_vm10, %v792_v21 }
 0x215   :  { %v556_v22 = vpop.f32.mrf.mxu2 }
 0x216   :  { %v575_v25 = vpop.f32.mrf.mxu3  ;;  %v557_v35 = vadd.f32 %v556_v22, %v514_v26 }
 0x217   :  { %v576_v39 = vadd.f32 %v575_v25, %v514_v26 }
 0x218   :  { %v585_v43 = vmax.f32 %v557_v35, 0.0 }
 0x219   :  { %v586_v46 = vmax.f32 %v576_v39, 0.0 }
 0x21a   :  { %v617_v52 = vmul.f32 %v600_v38, %v585_v43 }
 0x21b   :  { %v618_v56 = vmul.f32 %v600_v38, %v586_v46 }
 0x21d   :  { %v558_v28 = vpop.f32.mrf.mxu2 }
 0x21e   :  { %v577_v29 = vpop.f32.mrf.mxu3  ;;  %v559_v32 = vadd.f32 %v558_v28, %v519_v27 }
 0x21f   :  { %v578_v33 = vadd.f32 %v577_v29, %v519_v27 }
 0x220   :  { %v587_v41 = vmax.f32 %v559_v32, 0.0 }
 0x221   :  { %v588_v42 = vmax.f32 %v578_v33, 0.0 }
 0x222   :  { %v619_v48 = vmul.f32 %v605_v45, %v587_v41 }
 0x223   :  { %v620_v50 = vmul.f32 %v605_v45, %v588_v42 }
 0x224   :  { %v625_v59 = vadd.f32 %v619_v48, %v617_v52 }
 0x225   :  { %v561_v34 = vpop.f32.mrf.mxu2  ;;  %v634_v62 = vadd.f32 %v620_v50, %v618_v56 }
 0x226   :  { %v562_v36 = vadd.f32 %v561_v34, %v524_v30  ;;  %v580_v37 = vpop.f32.mrf.mxu3 }
 0x227   :  { %v581_v40 = vadd.f32 %v580_v37, %v524_v30 }
 0x228   :  { %v589_v44 = vmax.f32 %v562_v36, 0.0 }
 0x229   :  { %v590_v47 = vmax.f32 %v581_v40, 0.0 }
 0x22a   :  { %v621_v53 = vmul.f32 %v610_v49, %v589_v44 }
 0x22b   :  { %v622_v57 = vmul.f32 %v610_v49, %v590_v47 }
 0x22c   :  { %v626_v0 = vadd.f32 %v625_v59, %v621_v53 }
 0x22d   :  { %v563_v51 = vpop.f32.mrf.mxu2  ;;  %v635_v3 = vadd.f32 %v634_v62, %v622_v57 }
 0x22e   :  { %v564_v54 = vadd.f32 %v563_v51, %v529_v31  ;;  %v582_v55 = vpop.f32.mrf.mxu3 }
 0x22f   :  { %v583_v58 = vadd.f32 %v582_v55, %v529_v31 }
 0x230   :  { %v591_v60 = vmax.f32 %v564_v54, 0.0 }
 0x231   :  { %v592_v63 = vmax.f32 %v583_v58, 0.0 }
 0x232   :  { %v623_v1 = vmul.f32 %v615_v61, %v591_v60 }
 0x233   :  { %v624_v4 = vmul.f32 %v615_v61, %v592_v63 }
 0x234   :  { %v627_v5 = vadd.f32 %v626_v0, %v623_v1 }
 0x235   :  { %v636_v6 = vadd.f32 %v635_v3, %v624_v4 }
 0x236   :  { %v628_v7 = vrot.slane %v627_v5, 4 }
 0x237   :  { %v637_v8 = vrot.slane %v636_v6, 4 }
 0x238   :  { %v629_v9 = vadd.f32 %v628_v7, %v627_v5 }
 0x239   :  { %v638_v10 = vadd.f32 %v637_v8, %v636_v6 }
 0x23a   :  { %v630_v11 = vrot.slane %v629_v9, 2 }
 0x23b   :  { %v639_v12 = vrot.slane %v638_v10, 2 }
 0x23c   :  { %v631_v13 = vadd.f32 %v630_v11, %v629_v9 }
 0x23d   :  { %v640_v14 = vadd.f32 %v639_v12, %v638_v10 }
 0x23e   :  { %v632_v16 = vrot.slane %v631_v13, 1 }
 0x23f   :  { %v641_v17 = vrot.slane %v640_v14, 1 }
 0x240   :  { %v633_v20 = vadd.f32 %v632_v16, %v631_v13 }
 0x241   :  { %v642_v19 = vadd.f32 %v641_v17, %v640_v14 }
 0x242   :  { %v650_v24 = vadd.f32 %v649_v18, %v633_v20 }
 0x243   :  { %v651_v23 = vadd.f32 %v649_v18, %v642_v19 }
 0x245   :  { %v654_v21 = vrot.slane %v651_v23, 7 }
 0x247   :  { %v656_v22 = vsel %vm655_vm0, %v650_v24, %v654_v21 }
 0x248   :  { %662 = vst.msk [vmem:[#allocation3] sm:$0x3] %vm660_vm3, %v656_v22 }
 0x249   :  { %673 = dma.vmem_to_hbm [thread:$0]  %s669_s23, 32, %s671_s26, [#allocation4]  }
 0x24a   :  { %823 = dma.done.wait [#allocation4], 32  }
 0x24b   :  { %824 = vsyncadd [#allocation4], 4294967264 }
 0x24c   :  { %678 = vsyncpa [#allocation4], 1 }

</bundles_post_ra>
